<compile_context>
chip_gen: v6e
topology: v6e:2x2x1
jax: 0.10.0
libtpu: 0.0.40
codegen_flags: <defaults>
</compile_context>

<pallas_src>
import math
from functools import partial

import jax
import jax.numpy as jnp
from jax.experimental import pallas as pl
from jax.experimental.pallas import tpu as pltpu


def _ru(x, m):
    return (x + m - 1) // m * m


# ---------------------------------------------------------------------------
# Pallas kernel 1: matmul with fused bias + activation (bf16 operands, f32 acc)
# ---------------------------------------------------------------------------
def _matmul_kernel(a_ref, b_ref, bias_ref, o_ref, *, activation):
    y = jnp.dot(a_ref[...], b_ref[...], preferred_element_type=jnp.float32)
    y = y + bias_ref[...]
    if activation == "relu":
        y = jnp.maximum(y, 0.0)
    elif activation == "sigmoid":
        y = jax.nn.sigmoid(y)
    o_ref[...] = y.astype(o_ref.dtype)


@partial(jax.jit, static_argnames=("activation", "out_dtype"))
def matmul_bias_act(a, b, bias, activation=None, out_dtype=jnp.float32):
    """(M,K) @ (K,N) + bias[N], optional relu/sigmoid.

    Full-K single block (no K grid axis, K only padded to a sublane multiple), bf16 MXU operands,
    f32 accumulation/epilogue, shape-adaptive M/N tiles, both grid axes parallel."""
    M, K = a.shape
    _, N = b.shape
    Kp = _ru(K, 8)                          # K stays untiled; avoid 128-padding K (e.g. conv1 K=18)
    Mp0 = _ru(M, 8)
    if Mp0 <= 512:
        tm, Mp = Mp0, Mp0
    else:
        tm, Mp = 512, _ru(Mp0, 512)
    Np0 = _ru(N, 128)
    if Np0 <= 1024:
        tn, Np = Np0, Np0
    else:
        tn, Np = 512, _ru(Np0, 512)

    a_p = jnp.pad(a, ((0, Mp - M), (0, Kp - K))).astype(jnp.bfloat16)
    b_p = jnp.pad(b, ((0, Kp - K), (0, Np - N))).astype(jnp.bfloat16)
    bias_p = jnp.pad(bias.astype(jnp.float32), ((0, Np - N),)).reshape(1, Np)

    out = pl.pallas_call(
        partial(_matmul_kernel, activation=activation),
        out_shape=jax.ShapeDtypeStruct((Mp, Np), out_dtype),
        grid=(Mp // tm, Np // tn),
        in_specs=[
            pl.BlockSpec((tm, Kp), lambda i, j: (i, 0)),
            pl.BlockSpec((Kp, tn), lambda i, j: (0, j)),
            pl.BlockSpec((1, tn), lambda i, j: (0, j)),
        ],
        out_specs=pl.BlockSpec((tm, tn), lambda i, j: (i, j)),
        compiler_params=pltpu.CompilerParams(
            dimension_semantics=("parallel", "parallel")),
    )(a_p, b_p, bias_p)
    return out[:M, :N]


# ---------------------------------------------------------------------------
# Pallas kernel 2: matmul + bias + residual-add + LayerNorm (eps=1e-6) fused epilogue
# ---------------------------------------------------------------------------
def _matmul_res_ln_kernel(a_ref, b_ref, bias_ref, r_ref, g_ref, be_ref, o_ref, *, eps):
    y = jnp.dot(a_ref[...], b_ref[...], preferred_element_type=jnp.float32)
    y = y + bias_ref[...] + r_ref[...]
    mu = jnp.mean(y, axis=-1, keepdims=True)
    yc = y - mu
    var = jnp.mean(yc * yc, axis=-1, keepdims=True)
    inv = jax.lax.rsqrt(var + eps)
    o_ref[...] = ((yc * inv) * g_ref[...] + be_ref[...]).astype(o_ref.dtype)


@jax.jit
def matmul_residual_layernorm(a, b, bias, resid, gamma, beta):
    """LayerNorm(a @ b + bias + resid) over the last dim (eps=1e-6, affine).

    N must be a 128 multiple and is kept in one block (LN reduces over it); M is tiled."""
    M, K = a.shape
    _, N = b.shape
    assert N % 128 == 0
    Kp = _ru(K, 8)
    Mp0 = _ru(M, 8)
    if Mp0 <= 512:
        tm, Mp = Mp0, Mp0
    else:
        tm, Mp = 512, _ru(Mp0, 512)
    a_p = jnp.pad(a, ((0, Mp - M), (0, Kp - K))).astype(jnp.bfloat16)
    b_p = jnp.pad(b, ((0, Kp - K), (0, 0))).astype(jnp.bfloat16)
    r_p = jnp.pad(resid.astype(jnp.float32), ((0, Mp - M), (0, 0)))
    bias_p = bias.astype(jnp.float32).reshape(1, N)
    g = gamma.reshape(1, N).astype(jnp.float32)
    be = beta.reshape(1, N).astype(jnp.float32)
    out = pl.pallas_call(
        partial(_matmul_res_ln_kernel, eps=1e-6),
        out_shape=jax.ShapeDtypeStruct((Mp, N), jnp.float32),
        grid=(Mp // tm,),
        in_specs=[
            pl.BlockSpec((tm, Kp), lambda i: (i, 0)),
            pl.BlockSpec((Kp, N), lambda i: (0, 0)),
            pl.BlockSpec((1, N), lambda i: (0, 0)),
            pl.BlockSpec((tm, N), lambda i: (i, 0)),
            pl.BlockSpec((1, N), lambda i: (0, 0)),
            pl.BlockSpec((1, N), lambda i: (0, 0)),
        ],
        out_specs=pl.BlockSpec((tm, N), lambda i: (i, 0)),
        compiler_params=pltpu.CompilerParams(dimension_semantics=("parallel",)),
    )(a_p, b_p, bias_p, r_p, g, be)
    return out[:M]


# ---------------------------------------------------------------------------
# Pallas kernel 3: head-packed block attention (logits + bias + softmax + AV)
# ---------------------------------------------------------------------------
def _attn_kernel(q_ref, k_ref, v_ref, bias_ref, o_ref, *, nh):
    q = q_ref[0]          # (Lq, nh*hd), lane-dense
    k = k_ref[0]          # (Lk, nh*hd)
    v = v_ref[0]
    bias = bias_ref[...]  # (Lq, Lk)
    D = q.shape[-1]
    hd = D // nh
    outs = []
    for h in range(nh):   # static unroll over heads; all loads/stores stay 128-lane dense
        lo, hi = h * hd, (h + 1) * hd
        # logits[q, k] = sum_d q[q, d] * k[k, d]   (== torch.einsum('...kd,...qd->...qk', k, q))
        logits = jax.lax.dot_general(
            q[:, lo:hi], k[:, lo:hi], (((1,), (1,)), ((), ())),
            preferred_element_type=jnp.float32) + bias
        m = jnp.max(logits, axis=-1, keepdims=True)
        p = jnp.exp(logits - m)
        w = p / jnp.sum(p, axis=-1, keepdims=True)
        outs.append(jnp.dot(w, v[:, lo:hi], preferred_element_type=jnp.float32))
    o_ref[0] = jnp.concatenate(outs, axis=-1).astype(o_ref.dtype)


@partial(jax.jit, static_argnames=("nh",))
def attn_blocks(q, k, v, bias, nh=8):
    """q: (G, Lq, nh*hd); k, v: (G, Lk, nh*hd); bias: (Lq, Lk) -> (G, Lq, nh*hd)."""
    G, Lq, D = q.shape
    Lk = k.shape[1]
    return pl.pallas_call(
        partial(_attn_kernel, nh=nh),
        out_shape=jax.ShapeDtypeStruct((G, Lq, D), jnp.float32),
        grid=(G,),
        in_specs=[
            pl.BlockSpec((1, Lq, D), lambda g: (g, 0, 0)),
            pl.BlockSpec((1, Lk, D), lambda g: (g, 0, 0)),
            pl.BlockSpec((1, Lk, D), lambda g: (g, 0, 0)),
            pl.BlockSpec((Lq, Lk), lambda g: (0, 0)),
        ],
        out_specs=pl.BlockSpec((1, Lq, D), lambda g: (g, 0, 0)),
        compiler_params=pltpu.CompilerParams(dimension_semantics=("parallel",)),
    )(q, k, v, bias)


# ---------------------------------------------------------------------------
# Pallas kernel 4: GRU recurrence (one direction per grid step, VMEM-resident state)
# ---------------------------------------------------------------------------
def _gru_kernel(gi_ref, whh_ref, bhh_ref, hs_ref, h_sc):
    """gi_ref: (T, Bp, 3H) precomputed input projections; PyTorch gate order (r, z, n)."""
    Hh = h_sc.shape[-1]
    Tn = gi_ref.shape[0]
    h_sc[...] = jnp.zeros_like(h_sc)

    def step(t, carry):
        g = gi_ref[t]                                                 # (Bp, 3H)
        h = h_sc[...]
        gh = jnp.dot(h, whh_ref[0], preferred_element_type=jnp.float32) + bhh_ref[0]
        r = jax.nn.sigmoid(g[:, :Hh] + gh[:, :Hh])
        z = jax.nn.sigmoid(g[:, Hh:2 * Hh] + gh[:, Hh:2 * Hh])
        n = jnp.tanh(g[:, 2 * Hh:] + r * gh[:, 2 * Hh:])
        h_new = (1.0 - z) * n + z * h
        h_sc[...] = h_new
        hs_ref[t] = h_new
        return carry

    jax.lax.fori_loop(0, Tn, step, 0)


@jax.jit
def _gru_pallas(gi, whh, bhh):
    """gi: (2T, Bp, 3H) (forward rows then time-reversed backward rows); whh: (2, H, 3H)."""
    T2, Bp, G3 = gi.shape
    H = whh.shape[1]
    T = T2 // 2
    return pl.pallas_call(
        _gru_kernel,
        out_shape=jax.ShapeDtypeStruct((T2, Bp, H), jnp.float32),
        grid=(2,),
        in_specs=[
            pl.BlockSpec((T, Bp, G3), lambda d: (d, 0, 0)),
            pl.BlockSpec((1, H, G3), lambda d: (d, 0, 0)),
            pl.BlockSpec((1, 1, G3), lambda d: (d, 0, 0)),
        ],
        out_specs=pl.BlockSpec((T, Bp, H), lambda d: (d, 0, 0)),
        scratch_shapes=[pltpu.VMEM((Bp, H), jnp.float32)],
        compiler_params=pltpu.CompilerParams(dimension_semantics=("parallel",)),
    )(gi, whh, bhh)


def gru_bidir(x, p):
    """x: (B, T, in) -> (B, T, 2*hidden).  Both directions' input projections run as one Pallas
    matmul (W_ih concatenated); the sequential recurrence runs in the VMEM-resident GRU kernel."""
    B, T, _ = x.shape
    H = p["whh_f"].shape[0]
    Bp = _ru(max(B, 8), 8)
    x2 = x.reshape(B * T, -1)
    gi = matmul_bias_act(x2, p["wih"], p["bih"]).reshape(B, T, 6 * H)
    gi_f = jnp.transpose(gi[..., :3 * H], (1, 0, 2))        # (T, B, 3H), forward time order
    gi_b = jnp.transpose(gi[..., 3 * H:], (1, 0, 2))[::-1]  # backward consumes reversed time
    gi_all = jnp.concatenate([gi_f, gi_b], axis=0)           # (2T, B, 3H)
    gi_all = jnp.pad(gi_all, ((0, 0), (0, Bp - B), (0, 0)))
    whh = jnp.stack([p["whh_f"], p["whh_b"]], axis=0)
    bhh = jnp.stack([p["bhh_f"], p["bhh_b"]], axis=0).reshape(2, 1, 3 * H)
    hs = _gru_pallas(gi_all, whh, bhh)                        # (2T, Bp, H)
    hs_f = hs[:T, :B]
    hs_b = hs[T:, :B][::-1]                                   # re-align backward states to time
    return jnp.concatenate([hs_f, hs_b], axis=-1).transpose(1, 0, 2)


# ---------------------------------------------------------------------------
# Convolutions (3x3, pad 1) via bf16 im2col + Pallas matmul, BN pre-folded, fused ReLU
# ---------------------------------------------------------------------------
def _im2col_3x3(x):
    """x: (B, H, W, C) -> (B*H*W, 9*C) patches, (dy, dx, c)-major (matches weight layout)."""
    B, H, W, C = x.shape
    xp = jnp.pad(x, ((0, 0), (1, 1), (1, 1), (0, 0)))
    cols = [xp[:, dy:dy + H, dx:dx + W, :] for dy in range(3) for dx in range(3)]
    patches = jnp.stack(cols, axis=3)                  # (B, H, W, 9, C)
    return patches.reshape(B * H * W, 9 * C)


# TODO(synk): a fully halo-fused conv kernel (DMA (h+2, W+2, Cin) slabs + 9 shifted dots) is not
# implemented; im2col patches are materialized in bf16 instead, which already halves the HBM traffic.
def conv_bn_relu(x, w_eff, shift):
    """x: (B,H,W,Cin) bf16; w_eff: (9*Cin, Cout) with eval-BN scale pre-folded; shift: BN shift."""
    B, H, W, _ = x.shape
    cols = _im2col_3x3(x)
    y = matmul_bias_act(cols, w_eff, shift, activation="relu", out_dtype=jnp.bfloat16)
    return y.reshape(B, H, W, -1)


def avg_pool_freq(x):
    # F.avg_pool2d(kernel=(1,2)) in NCHW == pool over the mel axis (W) in NHWC
    B, H, W, C = x.shape
    return x.reshape(B, H, W // 2, 2, C).mean(axis=3)


# ---------------------------------------------------------------------------
# local_1d multi-head self-attention (Attn) + DecoderLayer
# ---------------------------------------------------------------------------
def attn_core(X, p):
    """Attn without the final output_dense (fused downstream with residual+LN)."""
    B, S, D = X.shape                # D = hidden = kd = vd = 128
    nh = 8
    X2 = X.reshape(B * S, D)
    # fused QKV projection; per-head scale pre-folded into the Q columns at build time
    qkv = matmul_bias_act(X2, p["wqkv"], jnp.zeros((3 * D,), jnp.float32)).reshape(B, S, 3 * D)
    q, k, v = qkv[..., :D], qkv[..., D:2 * D], qkv[..., 2 * D:]

    blen = 128
    assert S % blen == 0, "sequence length must be a multiple of block_length (then F.pad amount is 0)"
    nb = S // blen

    bias_first = -1e9 * jnp.triu(jnp.ones((blen, blen), jnp.float32), 1)
    first = attn_blocks(q[:, :blen], k[:, :blen], v[:, :blen], bias_first, nh=nh)  # (B, blen, D)

    if nb > 1:
        q5 = q.reshape(B, nb, blen, D)
        k5 = k.reshape(B, nb, blen, D)
        v5 = v.reshape(B, nb, blen, D)
        local_k = jnp.concatenate([k5[:, :-1], k5[:, 1:]], axis=2)   # (B, nb-1, 2*blen, D)
        local_v = jnp.concatenate([v5[:, :-1], v5[:, 1:]], axis=2)
        tail_q = q5[:, 1:]
        bias_tail = -1e9 * jnp.triu(jnp.ones((blen, 2 * blen), jnp.float32), blen + 1)
        G = B * (nb - 1)
        tail = attn_blocks(tail_q.reshape(G, blen, D),
                           local_k.reshape(G, 2 * blen, D),
                           local_v.reshape(G, 2 * blen, D),
                           bias_tail, nh=nh).reshape(B, (nb - 1) * blen, D)
        result = jnp.concatenate([first, tail], axis=1)[:, :S]
    else:
        result = first[:, :S]
    return result


def decoder_layer(X, p):
    # dropout = identity (inference)
    B, S, D = X.shape
    Xf = X.reshape(B * S, D)
    result = attn_core(X, p).reshape(B * S, D)
    # output_dense (bias-free) + residual + LayerNorm fused in one kernel
    X1 = matmul_residual_layernorm(result, p["wo"], jnp.zeros((D,), jnp.float32),
                                   Xf, p["ln1_g"], p["ln1_b"])
    h1 = matmul_bias_act(X1, p["fc1_w"], p["fc1_b"], activation="relu")
    # fc2 + residual + LayerNorm fused in one kernel
    X2 = matmul_residual_layernorm(h1, p["fc2_w"], p["fc2_b"], X1, p["ln2_g"], p["ln2_b"])
    return X2.reshape(B, S, D)


# ---------------------------------------------------------------------------
# AcousticModelCRnn8Dropout (first conv layer is shared across branches, see crnn_forward)
# ---------------------------------------------------------------------------
def acoustic_forward(h1, p, classes_num):
    """h1: relu(bn1(conv1(x))) of conv_block1, shape (B, T, mel, 48) bf16."""
    x = conv_bn_relu(h1, p["cb1"]["w2"], p["cb1"]["b2"])
    x = avg_pool_freq(x)                               # pool_size=(1,2)
    for i in (2, 3, 4):
        cb = p[f"cb{i}"]
        x = conv_bn_relu(x, cb["w1"], cb["b1"])
        x = conv_bn_relu(x, cb["w2"], cb["b2"])
        x = avg_pool_freq(x)
    B, T, Wf, C = x.shape                              # (B, T, mel/16, 128)

    # NCHW flatten(2).transpose(1,2) == NHWC reshape to (B, T*Wf, C)
    s = x.reshape(B, T * Wf, C).astype(jnp.float32)
    s = decoder_layer(s, p["attn"])

    # NCHW: transpose(1,2) -> reshape(B,128,T,Wf) -> transpose(1,2) -> flatten(2)
    z = s.reshape(B, T, Wf, C).transpose(0, 1, 3, 2).reshape(B, T, C * Wf)

    # fc5 (bias-free) with BatchNorm1d(768) eval stats pre-folded in, then ReLU
    z = matmul_bias_act(z.reshape(B * T, C * Wf), p["fc5_w"], p["fc5_b"],
                        activation="relu").reshape(B, T, 768)
    z = gru_bidir(z, p["gru"])                         # (B, T, 512)
    out = matmul_bias_act(z.reshape(B * T, -1), p["fc_w"], p["fc_b"], activation="sigmoid")
    return out.reshape(B, T, classes_num)


# ---------------------------------------------------------------------------
# Regress_onset_offset_frame_velocity_CRNN forward
# ---------------------------------------------------------------------------
_BRANCHES = ("frame", "reg_onset", "reg_offset")


def crnn_forward(x, params, classes_num):
    """x: (B, time_steps, mel_bins, 2)."""
    bn0_scale, bn0_shift = params["bn0"]               # BatchNorm2d over the mel axis (eval)
    x = x * bn0_scale[None, None, :, None] + bn0_shift[None, None, :, None]
    x = x.astype(jnp.bfloat16)
    B, T, M, _ = x.shape

    # The three acoustic branches see identical input: share one im2col + one matmul for their
    # first conv (first-conv weights concatenated along Cout).
    cols0 = _im2col_3x3(x)
    w_cat = jnp.concatenate([params[b]["cb1"]["w1"] for b in _BRANCHES], axis=1)
    s_cat = jnp.concatenate([params[b]["cb1"]["b1"] for b in _BRANCHES], axis=0)
    h_cat = matmul_bias_act(cols0, w_cat, s_cat, activation="relu",
                            out_dtype=jnp.bfloat16).reshape(B, T, M, -1)
    co = params["frame"]["cb1"]["w1"].shape[1]
    h1 = {b: h_cat[..., i * co:(i + 1) * co] for i, b in enumerate(_BRANCHES)}

    frame_out = acoustic_forward(h1["frame"], params["frame"], classes_num)
    reg_onset_out = acoustic_forward(h1["reg_onset"], params["reg_onset"], classes_num)
    reg_offset_out = acoustic_forward(h1["reg_offset"], params["reg_offset"], classes_num)

    Bs, Ts, C = reg_onset_out.shape
    h = gru_bidir(reg_onset_out, params["reg_onset_gru"])
    reg_onset_output = matmul_bias_act(
        h.reshape(Bs * Ts, -1), params["reg_onset_fc_w"], params["reg_onset_fc_b"],
        activation="sigmoid").reshape(Bs, Ts, C)

    cat = jnp.concatenate([frame_out, reg_onset_output, reg_offset_out], axis=2)  # (B, T, 3*classes)
    h2 = gru_bidir(cat, params["frame_gru"])
    frame_output = matmul_bias_act(
        h2.reshape(Bs * Ts, -1), params["frame_fc_w"], params["frame_fc_b"],
        activation="sigmoid").reshape(Bs, Ts, C)

    return {
        "reg_onset_output": reg_onset_output,
        "reg_offset_output": reg_offset_out,
        "frame_output": frame_output,
    }


# ---------------------------------------------------------------------------
# Deterministic parameter construction (synthetic; shapes match the module __init__,
# BatchNorm folded into the preceding weights once here).
# ---------------------------------------------------------------------------
class _KeyGen:
    def __init__(self, key):
        self._key = key

    def __call__(self):
        self._key, sub = jax.random.split(self._key)
        return sub


def build_params(key, classes_num, mel_bins):
    kg = _KeyGen(key)

    def xavier(shape, fan_in, fan_out):
        a = math.sqrt(6.0 / (fan_in + fan_out))
        return jax.random.uniform(kg(), shape, jnp.float32, -a, a)

    def bn_stats(n, eps):
        gamma = jnp.ones((n,), jnp.float32)
        beta = jnp.zeros((n,), jnp.float32)
        mean = jnp.zeros((n,), jnp.float32)
        var = jnp.ones((n,), jnp.float32)
        scale = gamma / jnp.sqrt(var + eps)
        shift = beta - mean * scale
        return scale, shift

    def conv_folded(ci, co):
        # Conv2d 3x3 no bias; the reference calls nn.BatchNorm2d(co, momentum) positionally,
        # so the second argument actually sets eps=0.01.  Fold eval-BN into the conv weights here.
        w = xavier((3, 3, ci, co), 9 * ci, 9 * co).reshape(9 * ci, co)  # (dy,dx,cin)-major
        scale, shift = bn_stats(co, 0.01)
        return w * scale[None, :], shift

    def gru_params(in_sz, hid):
        bi = math.sqrt(3.0 / in_sz)
        bh = math.sqrt(3.0 / hid)
        p = {}
        wih, bih = [], []
        for d in ("f", "b"):
            wih.append(jax.random.uniform(kg(), (in_sz, 3 * hid), jnp.float32, -bi, bi))
            bih.append(jnp.zeros((3 * hid,), jnp.float32))
            p[f"whh_{d}"] = jax.random.uniform(kg(), (hid, 3 * hid), jnp.float32, -bh, bh)
            p[f"bhh_{d}"] = jnp.zeros((3 * hid,), jnp.float32)
        p["wih"] = jnp.concatenate(wih, axis=1)      # both directions' input projections fused
        p["bih"] = jnp.concatenate(bih, axis=0)
        return p

    midfeat = 128 * (mel_bins // 16)        # 3072 for the full-size mel_bins=384

    def acoustic():
        p = {}
        for idx, (ci, co) in enumerate([(2, 48), (48, 64), (64, 96), (96, 128)], start=1):
            w1, b1 = conv_folded(ci, co)
            w2, b2 = conv_folded(co, co)
            p[f"cb{idx}"] = dict(w1=w1, b1=b1, w2=w2, b2=b2)
        # fc5 (bias-free) followed by BatchNorm1d(768, momentum=momentum) -> eps=1e-5; fold BN in.
        w5 = xavier((midfeat, 768), midfeat, 768)
        s5, sh5 = bn_stats(768, 1e-5)
        p["fc5_w"] = w5 * s5[None, :]
        p["fc5_b"] = sh5
        H = 128
        nh = 8
        hd = H // nh
        wq = xavier((H, H), H, H)
        wk = xavier((H, H), H, H)
        wv = xavier((H, H), H, H)
        p["attn"] = dict(
            # fused QKV weights; per-head 1/sqrt(hd) scale folded into the Q columns
            wqkv=jnp.concatenate([wq * (hd ** -0.5), wk, wv], axis=1),
            wo=xavier((H, H), H, H),
            ln1_g=jnp.ones((H,), jnp.float32), ln1_b=jnp.zeros((H,), jnp.float32),
            fc1_w=xavier((H, H), H, H), fc1_b=jnp.zeros((H,), jnp.float32),
            fc2_w=xavier((H, H), H, H), fc2_b=jnp.zeros((H,), jnp.float32),
            ln2_g=jnp.ones((H,), jnp.float32), ln2_b=jnp.zeros((H,), jnp.float32),
        )
        p["gru"] = gru_params(768, 256)
        p["fc_w"] = xavier((512, classes_num), 512, classes_num)
        p["fc_b"] = jnp.zeros((classes_num,), jnp.float32)
        return p

    return {
        "bn0": bn_stats(mel_bins, 0.01),    # nn.BatchNorm2d(mel_bins, momentum) positional -> eps=0.01
        "frame": acoustic(),
        "reg_onset": acoustic(),
        "reg_offset": acoustic(),
        "reg_onset_gru": gru_params(classes_num, 256),
        "reg_onset_fc_w": xavier((512, classes_num), 512, classes_num),
        "reg_onset_fc_b": jnp.zeros((classes_num,), jnp.float32),
        "frame_gru": gru_params(classes_num * 3, 256),
        "frame_fc_w": xavier((512, classes_num), 512, classes_num),
        "frame_fc_b": jnp.zeros((classes_num,), jnp.float32),
    }


if __name__ == "__main__":
    classes_num = 88                         # implied by reg_onset_gru(input_size=88)
    # Reduced test shapes (full-size model: T=256, mel=384 -> midfeat=3072).  The code is
    # shape-generic; small shapes keep the run fast.
    B, T, MEL, CH = 1, 32, 64, 2

    key = jax.random.PRNGKey(0)
    k_params, k_input = jax.random.split(key)
    params = build_params(k_params, classes_num, MEL)
    x = jax.random.normal(k_input, (B, T, MEL, CH), jnp.float32)

    out = crnn_forward(x, params, classes_num)
    out = jax.block_until_ready(out)

    for name in ("reg_onset_output", "reg_offset_output", "frame_output"):
        v = out[name]
        assert v.shape == (B, T, classes_num), (name, v.shape)
        assert bool(jnp.all(jnp.isfinite(v))), name
        assert bool(jnp.all((v >= 0.0) & (v <= 1.0))), name   # every head ends in a sigmoid

    print("KERNEL_OK")
</pallas_src>

<mosaic_0001>
module attributes {stable_mosaic.version = 11 : i64} {
  func.func @_matmul_kernel(%arg0: i32, %arg1: i32, %arg2: memref<512x24xbf16, #tpu.memory_space<vmem>>, %arg3: memref<24x256xbf16, #tpu.memory_space<vmem>>, %arg4: memref<1x256xf32, #tpu.memory_space<vmem>>, %arg5: memref<512x256xbf16, #tpu.memory_space<vmem>>) attributes {dimension_semantics = [#tpu.dimension_semantics<parallel>, #tpu.dimension_semantics<parallel>], iteration_bounds = array<i64: 4, 1>, scalar_prefetch = 0 : i64, scratch_operands = 0 : i64, tpu.core_type = #tpu.core_type<tc>, window_params = [{transform_indices = @transform_0, window_bounds = array<i64: 512, 24>}, {transform_indices = @transform_1, window_bounds = array<i64: 24, 256>}, {transform_indices = @transform_2, window_bounds = array<i64: 1, 256>}, {transform_indices = @transform_3, window_bounds = array<i64: 512, 256>}]} {
    %c0 = arith.constant 0 : index
    %c0_0 = arith.constant 0 : index
    %0 = vector.load %arg2[%c0, %c0_0] : memref<512x24xbf16, #tpu.memory_space<vmem>>, vector<512x24xbf16>
    %c0_1 = arith.constant 0 : index
    %c0_2 = arith.constant 0 : index
    %1 = vector.load %arg3[%c0_1, %c0_2] : memref<24x256xbf16, #tpu.memory_space<vmem>>, vector<24x256xbf16>
    %cst = arith.constant dense<0.000000e+00> : vector<512x256xf32>
    %2 = tpu.matmul %0, %1, %cst {dimension_numbers = #tpu.dot_dimension_numbers<[1], [0], [0], [1], [0, 0, 1, 1], [], []>} : vector<512x24xbf16>, vector<24x256xbf16>, vector<512x256xf32> -> vector<512x256xf32>
    %c0_3 = arith.constant 0 : index
    %c0_4 = arith.constant 0 : index
    %3 = vector.load %arg4[%c0_3, %c0_4] : memref<1x256xf32, #tpu.memory_space<vmem>>, vector<1x256xf32>
    %4 = vector.broadcast %3 : vector<1x256xf32> to vector<512x256xf32>
    %5 = arith.addf %2, %4 : vector<512x256xf32>
    %cst_5 = arith.constant 0.000000e+00 : f32
    %6 = vector.broadcast %cst_5 : f32 to vector<512x256xf32>
    %7 = arith.maximumf %5, %6 : vector<512x256xf32>
    %8 = arith.truncf %7 : vector<512x256xf32> to vector<512x256xbf16>
    %c0_6 = arith.constant 0 : index
    %c0_7 = arith.constant 0 : index
    %9 = vector.load %arg5[%c0_6, %c0_7] : memref<512x256xbf16, #tpu.memory_space<vmem>>, vector<512x256xbf16>
    tpu.vector_store %arg5[%c0_6, %c0_7], %8 {strides = array<i32>} : memref<512x256xbf16, #tpu.memory_space<vmem>>, vector<512x256xbf16>,
    return
  }
  func.func @transform_0(%arg0: i32, %arg1: i32) -> (i32, i32) {
    %c0_i32 = arith.constant 0 : i32
    %c0_i32_0 = arith.constant 0 : i32
    return %arg0, %c0_i32 : i32, i32
  }
  func.func @transform_1(%arg0: i32, %arg1: i32) -> (i32, i32) {
    %c0_i32 = arith.constant 0 : i32
    %c0_i32_0 = arith.constant 0 : i32
    return %c0_i32, %arg1 : i32, i32
  }
  func.func @transform_2(%arg0: i32, %arg1: i32) -> (i32, i32) {
    %c0_i32 = arith.constant 0 : i32
    %c0_i32_0 = arith.constant 0 : i32
    return %c0_i32, %arg1 : i32, i32
  }
  func.func @transform_3(%arg0: i32, %arg1: i32) -> (i32, i32) {
    %c0_i32 = arith.constant 0 : i32
    return %arg0, %arg1 : i32, i32
  }
}

</mosaic_0001>

<bundles_post_ra>
// kernel: matmul_bias_act.1
= control target key start
LH: loop header
LB: loop body
LE: loop exit
PB: predicated region body
PF: predicated region fallthrough
CT: control target
= control target key end

     0   :  { %s1962_s12 = smov 0   ;;  %s1964_s13 = smov 0   ;;  %s2307_s0 = inlined_call_operand.vmem [shape: bf16[2048,24], index: 0, kind: input, shape index: {}]   ;;  %s2308_s1 = inlined_call_operand.vmem [shape: bf16[24,256], index: 1, kind: input, shape index: {}]   ;;  %s2309_s2 = inlined_call_operand.vmem [shape: f32[1,256], index: 2, kind: input, shape index: {}]   ;;  %s2310_s3 = inlined_call_operand.vmem [shape: bf16[2048,256], index: 3, kind: output, shape index: {}]  }
   0x1   :  { %s1966_s14 = smov 0  }
   0x2 LB: > { %s25_s15 = sadd.s32 1, %s1935_s13  ;;  %p1645_p0 = scmp.ge.s32.totalorder %s1939_s14, 1  ;;  %s1939_s14 = sphi %s1966_s14, %s13_s14   ;;  %s1935_s13 = sphi %s1964_s13, %s2312_s13   ;;  %s1931_s12 = sphi %s1962_s12, %s2311_s12  }
   0x3   : > { %p27_p1 = scmp.ge.s32.totalorder %s25_s15, 4  ;;  %p173_p2 = scmp.lt.s32.totalorder %s1939_s14, 5 }
   0x5   : > { %s2314_s15 = smov (%p27_p1, %s25_s15), 0  ;;  %p174_p3 = pnand %p1645_p0, %p173_p2 }
   0x6   : > { %s1646_s18 = sshll.u32 (!%p174_p3), %s1931_s12, 6 }
   0x7   : > { %177 = sbr.rel (%p174_p3) target bundleno = 349 (0x15d), region = 32  ;;  %p212_p4 = scmp.lt.s32.totalorder (!%p174_p3), %s1646_s18, 255 }
   0xc   : > { %v307_v0 = vld [vmem:[%s2308_s1 + $0x10] sm:$0xff]  ;;  %vm592_vm0 = vcmask 1043456   ;;  %v1882_v3 = vld [vmem:[%s2308_s1 + $0x4] ss:$8 sps:$4 sm:$0xff]   ;;  %v1941_v4 = vmov 0   ;;  %s2316_s18 = smov (!%p212_p4, %s1646_s18), 255  ;;  %v310_v39 = vlaneseq }
   0xd   : > { %v1686_v1 = vcombine.high %v307_v0, %v307_v0  ;;  %v1685_v2 = vcombine.low %v307_v0, %v307_v0  ;;  %631 = vmatprep.mubr.bf16.mxu0 %v1941_v4  ;;  %791 = vmatprep.mubr.bf16.mxu1 %v1941_v4  ;;  %v1884_v6 = vld [vmem:[%s2308_s1] ss:$8 sps:$4 sm:$0xff]   ;;  %s1647_s23 = sshll.u32 %s2316_s18, 2  ;;  %vm495_vm1 = vcmask 195584   ;;  %s1786_s29 = sshll.u32 %s2316_s18, 3 }
   0xe   : > { %s1997_s26 = scalar_lea.vmem %s2307_s0, %s1647_s23  ;;  %v311_v40 = vshrl.u32 %v310_v39, 7  ;;  %v308_v42 = vld [vmem:[%s2309_s2] sm:$0x3]  ;;  %s2108_s5 = scalar_lea.vmem %s2310_s3, %s1786_s29 }
   0xf   : > { %1687 = vmatprep.subr.msk.bf16.mxu0 %vm592_vm0, %v1686_v1  ;;  %1851 = vmatprep.subr.msk.bf16.mxu1 %vm592_vm0, %v1686_v1  ;;  %v594_v5 = vsel %vm592_vm0, %v1685_v2, 0  ;;  %v1885_v7 = vld [vmem:[%s1997_s26] sm:$0xff]   ;;  %v1887_v9 = vld [vmem:[%s1997_s26 + $0x8] sm:$0xff]   ;;  %v1889_v11 = vld [vmem:[%s1997_s26 + $0x10] sm:$0xff]  }
  0x10   : > { %612 = vmatpush1.bf16.msra.mxu0 %v594_v5  ;;  %1853 = vmatpush1.bf16.msra.mxu1 %v594_v5  ;;  %v1886_v8 = vld [vmem:[%s1997_s26 + $0x80] sm:$0xff]   ;;  %v1888_v10 = vld [vmem:[%s1997_s26 + $0x88] sm:$0xff]   ;;  %v1890_v12 = vld [vmem:[%s1997_s26 + $0x90] sm:$0xff]   ;;  %v312_v41 = vsub.s32 0, %v311_v40  ;;  %v316_v43 = vsub.s32 1, %v311_v40 }
  0x11   : > { %613 = vmatprep.subr.bf16.mxu0 %v1882_v3  ;;  %1852 = vmatprep.subr.bf16.mxu1 %v1882_v3  ;;  %v1891_v13 = vld [vmem:[%s1997_s26 + $0x18] sm:$0xff]   ;;  %v1893_v15 = vld [vmem:[%s1997_s26 + $0x20] sm:$0xff]   ;;  %v1895_v17 = vld [vmem:[%s1997_s26 + $0x28] sm:$0xff]  }
  0x12   : > { %v1892_v14 = vld [vmem:[%s1997_s26 + $0x98] sm:$0xff]   ;;  %v1894_v16 = vld [vmem:[%s1997_s26 + $0xa0] sm:$0xff]   ;;  %v1896_v18 = vld [vmem:[%s1997_s26 + $0xa8] sm:$0xff]   ;;  %v2096_v44 = vrot.slane %v308_v42, %v312_v41  ;;  %v2098_v45 = vrot.slane %v308_v42, %v316_v43 }
  0x13   : > { %v1897_v19 = vld [vmem:[%s1997_s26 + $0x30] sm:$0xff]   ;;  %v1899_v21 = vld [vmem:[%s1997_s26 + $0x38] sm:$0xff]   ;;  %v1901_v23 = vld [vmem:[%s1997_s26 + $0x40] sm:$0xff]  }
  0x14   : > { %614 = vmatpush1.bf16.msra.mxu0 %v1884_v6  ;;  %1854 = vmatpush1.bf16.msra.mxu1 %v1884_v6  ;;  %v1898_v20 = vld [vmem:[%s1997_s26 + $0xb0] sm:$0xff]   ;;  %v1900_v22 = vld [vmem:[%s1997_s26 + $0xb8] sm:$0xff]   ;;  %v1902_v24 = vld [vmem:[%s1997_s26 + $0xc0] sm:$0xff]  }
  0x15   : > { %v1903_v25 = vld [vmem:[%s1997_s26 + $0x48] sm:$0xff]   ;;  %v1905_v27 = vld [vmem:[%s1997_s26 + $0x50] sm:$0xff]   ;;  %v1907_v29 = vld [vmem:[%s1997_s26 + $0x58] sm:$0xff]  }
  0x16   : > { %v1904_v26 = vld [vmem:[%s1997_s26 + $0xc8] sm:$0xff]   ;;  %v1906_v28 = vld [vmem:[%s1997_s26 + $0xd0] sm:$0xff]   ;;  %v1908_v30 = vld [vmem:[%s1997_s26 + $0xd8] sm:$0xff]  }
  0x17   : > { %1688 = vmatmul.mubr.msk.bf16.vlgmr.msra.gmra.mxu0 %vm495_vm1, %v1885_v7  ;;  %1704 = vmatmul.mubr.msk.bf16.vlgmr.msra.gmra.mxu1 %vm495_vm1, %v1886_v8  ;;  %v1909_v31 = vld [vmem:[%s1997_s26 + $0x60] sm:$0xff]   ;;  %v1911_v33 = vld [vmem:[%s1997_s26 + $0x68] sm:$0xff]   ;;  %v1913_v35 = vld [vmem:[%s1997_s26 + $0x70] sm:$0xff]  }
  0x18   : > { %641 = vmatprep.mubr.bf16.mxu0 %v1941_v4  ;;  %801 = vmatprep.mubr.bf16.mxu1 %v1941_v4  ;;  %v1910_v32 = vld [vmem:[%s1997_s26 + $0xe0] sm:$0xff]   ;;  %v1912_v34 = vld [vmem:[%s1997_s26 + $0xe8] sm:$0xff]   ;;  %v1914_v36 = vld [vmem:[%s1997_s26 + $0xf0] sm:$0xff]  }
  0x19   : > { %v1915_v37 = vld [vmem:[%s1997_s26 + $0x78] sm:$0xff]  }
  0x1a   : > { %v1916_v38 = vld [vmem:[%s1997_s26 + $0xf8] sm:$0xff]  }
  0x1f   : > { %1689 = vmatmul.mubr.msk.bf16.gmra.mxu0 %vm495_vm1, %v1887_v9  ;;  %1705 = vmatmul.mubr.msk.bf16.gmra.mxu1 %vm495_vm1, %v1888_v10 }
  0x20   : > { %651 = vmatprep.mubr.bf16.mxu0 %v1941_v4  ;;  %811 = vmatprep.mubr.bf16.mxu1 %v1941_v4 }
  0x27   : > { %1690 = vmatmul.mubr.msk.bf16.gmra.mxu0 %vm495_vm1, %v1889_v11  ;;  %1706 = vmatmul.mubr.msk.bf16.gmra.mxu1 %vm495_vm1, %v1890_v12 }
  0x28   : > { %661 = vmatprep.mubr.bf16.mxu0 %v1941_v4  ;;  %821 = vmatprep.mubr.bf16.mxu1 %v1941_v4 }
  0x2f   : > { %1691 = vmatmul.mubr.msk.bf16.gmra.mxu0 %vm495_vm1, %v1891_v13  ;;  %1707 = vmatmul.mubr.msk.bf16.gmra.mxu1 %vm495_vm1, %v1892_v14 }
  0x30   : > { %671 = vmatprep.mubr.bf16.mxu0 %v1941_v4  ;;  %831 = vmatprep.mubr.bf16.mxu1 %v1941_v4 }
  0x37   : > { %1692 = vmatmul.mubr.msk.bf16.gmra.mxu0 %vm495_vm1, %v1893_v15  ;;  %1708 = vmatmul.mubr.msk.bf16.gmra.mxu1 %vm495_vm1, %v1894_v16 }
  0x38   : > { %681 = vmatprep.mubr.bf16.mxu0 %v1941_v4  ;;  %841 = vmatprep.mubr.bf16.mxu1 %v1941_v4 }
  0x3f   : > { %1693 = vmatmul.mubr.msk.bf16.gmra.mxu0 %vm495_vm1, %v1895_v17  ;;  %1709 = vmatmul.mubr.msk.bf16.gmra.mxu1 %vm495_vm1, %v1896_v18 }
  0x40   : > { %691 = vmatprep.mubr.bf16.mxu0 %v1941_v4  ;;  %851 = vmatprep.mubr.bf16.mxu1 %v1941_v4 }
  0x47   : > { %1694 = vmatmul.mubr.msk.bf16.gmra.mxu0 %vm495_vm1, %v1897_v19  ;;  %1710 = vmatmul.mubr.msk.bf16.gmra.mxu1 %vm495_vm1, %v1898_v20 }
  0x48   : > { %701 = vmatprep.mubr.bf16.mxu0 %v1941_v4  ;;  %861 = vmatprep.mubr.bf16.mxu1 %v1941_v4 }
  0x4f   : > { %1695 = vmatmul.mubr.msk.bf16.gmra.mxu0 %vm495_vm1, %v1899_v21  ;;  %1711 = vmatmul.mubr.msk.bf16.gmra.mxu1 %vm495_vm1, %v1900_v22 }
  0x50   : > { %711 = vmatprep.mubr.bf16.mxu0 %v1941_v4  ;;  %871 = vmatprep.mubr.bf16.mxu1 %v1941_v4 }
  0x57   : > { %1696 = vmatmul.mubr.msk.bf16.gmra.mxu0 %vm495_vm1, %v1901_v23  ;;  %1712 = vmatmul.mubr.msk.bf16.gmra.mxu1 %vm495_vm1, %v1902_v24 }
  0x58   : > { %721 = vmatprep.mubr.bf16.mxu0 %v1941_v4  ;;  %881 = vmatprep.mubr.bf16.mxu1 %v1941_v4 }
  0x5f   : > { %1697 = vmatmul.mubr.msk.bf16.gmra.mxu0 %vm495_vm1, %v1903_v25  ;;  %1713 = vmatmul.mubr.msk.bf16.gmra.mxu1 %vm495_vm1, %v1904_v26 }
  0x60   : > { %731 = vmatprep.mubr.bf16.mxu0 %v1941_v4  ;;  %891 = vmatprep.mubr.bf16.mxu1 %v1941_v4 }
  0x67   : > { %1698 = vmatmul.mubr.msk.bf16.gmra.mxu0 %vm495_vm1, %v1905_v27  ;;  %1714 = vmatmul.mubr.msk.bf16.gmra.mxu1 %vm495_vm1, %v1906_v28 }
  0x68   : > { %741 = vmatprep.mubr.bf16.mxu0 %v1941_v4  ;;  %901 = vmatprep.mubr.bf16.mxu1 %v1941_v4 }
  0x6f   : > { %1699 = vmatmul.mubr.msk.bf16.gmra.mxu0 %vm495_vm1, %v1907_v29  ;;  %1715 = vmatmul.mubr.msk.bf16.gmra.mxu1 %vm495_vm1, %v1908_v30 }
  0x70   : > { %751 = vmatprep.mubr.bf16.mxu0 %v1941_v4  ;;  %911 = vmatprep.mubr.bf16.mxu1 %v1941_v4 }
  0x77   : > { %1700 = vmatmul.mubr.msk.bf16.gmra.mxu0 %vm495_vm1, %v1909_v31  ;;  %1716 = vmatmul.mubr.msk.bf16.gmra.mxu1 %vm495_vm1, %v1910_v32 }
  0x78   : > { %761 = vmatprep.mubr.bf16.mxu0 %v1941_v4  ;;  %921 = vmatprep.mubr.bf16.mxu1 %v1941_v4 }
  0x7f   : > { %1701 = vmatmul.mubr.msk.bf16.gmra.mxu0 %vm495_vm1, %v1911_v33  ;;  %1717 = vmatmul.mubr.msk.bf16.gmra.mxu1 %vm495_vm1, %v1912_v34 }
  0x80   : > { %771 = vmatprep.mubr.bf16.mxu0 %v1941_v4  ;;  %931 = vmatprep.mubr.bf16.mxu1 %v1941_v4 }
  0x87   : > { %1702 = vmatmul.mubr.msk.bf16.gmra.mxu0 %vm495_vm1, %v1913_v35  ;;  %1718 = vmatmul.mubr.msk.bf16.gmra.mxu1 %vm495_vm1, %v1914_v36 }
  0x88   : > { %781 = vmatprep.mubr.bf16.mxu0 %v1941_v4  ;;  %941 = vmatprep.mubr.bf16.mxu1 %v1941_v4 }
  0x8f   : > { %1703 = vmatmul.mubr.msk.bf16.gmra.mxu0 %vm495_vm1, %v1915_v37  ;;  %1719 = vmatmul.mubr.msk.bf16.gmra.mxu1 %vm495_vm1, %v1916_v38 }
  0xd7   : > { %v633_v46 = vpop.f32.mrf.mxu0  ;;  %v793_v47 = vpop.f32.mrf.mxu1 }
  0xd8   : > { %v634_v48 = vadd.f32 %v633_v46, %v2096_v44  ;;  %v794_v49 = vadd.f32 %v793_v47, %v2096_v44 }
  0xd9   : > { %v635_v50 = vpop.f32.mrf.mxu0  ;;  %v795_v51 = vpop.f32.mrf.mxu1 }
  0xda   : > { %v636_v52 = vadd.f32 %v635_v50, %v2098_v45  ;;  %v796_v53 = vadd.f32 %v795_v51, %v2098_v45  ;;  %v952_v56 = vmax.f32 %v634_v48, 0.0  ;;  %v1016_v57 = vmax.f32 %v794_v49, 0.0 }
  0xdb   : > { %v637_v54 = vpop.f32.mrf.mxu0  ;;  %v797_v55 = vpop.f32.mrf.mxu1 }
  0xdc   : > { %v953_v58 = vmax.f32 %v636_v52, 0.0  ;;  %v1017_v59 = vmax.f32 %v796_v53, 0.0  ;;  %v638_v60 = vadd.f32 %v637_v54, %v2096_v44  ;;  %v798_v61 = vadd.f32 %v797_v55, %v2096_v44 }
  0xdd   : > { %v639_v62 = vpop.f32.mrf.mxu0  ;;  %v799_v63 = vpop.f32.mrf.mxu1 }
  0xde   : > { %v1787_v0 = vpack.c.bf16 %v953_v58, %v952_v56  ;;  %v1819_v1 = vpack.c.bf16 %v1017_v59, %v1016_v57  ;;  %v640_v2 = vadd.f32 %v639_v62, %v2098_v45  ;;  %v800_v3 = vadd.f32 %v799_v63, %v2098_v45 }
  0xdf   : > { %v643_v4 = vpop.f32.mrf.mxu0  ;;  %v803_v5 = vpop.f32.mrf.mxu1  ;;  %v954_v8 = vmax.f32 %v638_v60, 0.0  ;;  %v1018_v9 = vmax.f32 %v798_v61, 0.0 }
  0xe0   : > { %1464 = vst [vmem:[%s2108_s5] sm:$0xff] %v1787_v0  ;;  %1496 = vst [vmem:[%s2108_s5 + $0x100] sm:$0xff] %v1819_v1  ;;  %v644_v6 = vadd.f32 %v643_v4, %v2096_v44  ;;  %v804_v7 = vadd.f32 %v803_v5, %v2096_v44  ;;  %v955_v10 = vmax.f32 %v640_v2, 0.0  ;;  %v1019_v11 = vmax.f32 %v800_v3, 0.0 }
  0xe1   : > { %v645_v12 = vpop.f32.mrf.mxu0  ;;  %v805_v13 = vpop.f32.mrf.mxu1 }
  0xe2   : > { %v646_v14 = vadd.f32 %v645_v12, %v2098_v45  ;;  %v806_v15 = vadd.f32 %v805_v13, %v2098_v45  ;;  %v1788_v16 = vpack.c.bf16 %v955_v10, %v954_v8  ;;  %v1820_v17 = vpack.c.bf16 %v1019_v11, %v1018_v9 }
  0xe3   : > { %v647_v18 = vpop.f32.mrf.mxu0  ;;  %v807_v19 = vpop.f32.mrf.mxu1  ;;  %v956_v20 = vmax.f32 %v644_v6, 0.0  ;;  %v1020_v21 = vmax.f32 %v804_v7, 0.0 }
  0xe4   : > { %v957_v22 = vmax.f32 %v646_v14, 0.0  ;;  %v1021_v23 = vmax.f32 %v806_v15, 0.0  ;;  %1465 = vst [vmem:[%s2108_s5 + $0x8] sm:$0xff] %v1788_v16  ;;  %1497 = vst [vmem:[%s2108_s5 + $0x108] sm:$0xff] %v1820_v17  ;;  %v648_v24 = vadd.f32 %v647_v18, %v2096_v44  ;;  %v808_v25 = vadd.f32 %v807_v19, %v2096_v44 }
  0xe5   : > { %v649_v26 = vpop.f32.mrf.mxu0  ;;  %v809_v27 = vpop.f32.mrf.mxu1 }
  0xe6   : > { %v1789_v28 = vpack.c.bf16 %v957_v22, %v956_v20  ;;  %v1821_v29 = vpack.c.bf16 %v1021_v23, %v1020_v21  ;;  %v650_v30 = vadd.f32 %v649_v26, %v2098_v45  ;;  %v810_v31 = vadd.f32 %v809_v27, %v2098_v45 }
  0xe7   : > { %v653_v32 = vpop.f32.mrf.mxu0  ;;  %v813_v33 = vpop.f32.mrf.mxu1  ;;  %v958_v36 = vmax.f32 %v648_v24, 0.0  ;;  %v1022_v37 = vmax.f32 %v808_v25, 0.0 }
  0xe8   : > { %1466 = vst [vmem:[%s2108_s5 + $0x10] sm:$0xff] %v1789_v28  ;;  %1498 = vst [vmem:[%s2108_s5 + $0x110] sm:$0xff] %v1821_v29  ;;  %v654_v34 = vadd.f32 %v653_v32, %v2096_v44  ;;  %v814_v35 = vadd.f32 %v813_v33, %v2096_v44  ;;  %v959_v38 = vmax.f32 %v650_v30, 0.0  ;;  %v1023_v39 = vmax.f32 %v810_v31, 0.0 }
  0xe9   : > { %v655_v40 = vpop.f32.mrf.mxu0  ;;  %v815_v41 = vpop.f32.mrf.mxu1 }
  0xea   : > { %v656_v42 = vadd.f32 %v655_v40, %v2098_v45  ;;  %v816_v43 = vadd.f32 %v815_v41, %v2098_v45  ;;  %v1790_v46 = vpack.c.bf16 %v959_v38, %v958_v36  ;;  %v1822_v47 = vpack.c.bf16 %v1023_v39, %v1022_v37 }
  0xeb   : > { %v657_v48 = vpop.f32.mrf.mxu0  ;;  %v817_v49 = vpop.f32.mrf.mxu1  ;;  %v960_v50 = vmax.f32 %v654_v34, 0.0  ;;  %v1024_v51 = vmax.f32 %v814_v35, 0.0 }
  0xec   : > { %v961_v52 = vmax.f32 %v656_v42, 0.0  ;;  %v1025_v53 = vmax.f32 %v816_v43, 0.0  ;;  %1467 = vst [vmem:[%s2108_s5 + $0x18] sm:$0xff] %v1790_v46  ;;  %1499 = vst [vmem:[%s2108_s5 + $0x118] sm:$0xff] %v1822_v47  ;;  %v658_v54 = vadd.f32 %v657_v48, %v2096_v44  ;;  %v818_v55 = vadd.f32 %v817_v49, %v2096_v44 }
  0xed   : > { %v659_v56 = vpop.f32.mrf.mxu0  ;;  %v819_v57 = vpop.f32.mrf.mxu1 }
  0xee   : > { %v1791_v58 = vpack.c.bf16 %v961_v52, %v960_v50  ;;  %v1823_v59 = vpack.c.bf16 %v1025_v53, %v1024_v51  ;;  %v660_v60 = vadd.f32 %v659_v56, %v2098_v45  ;;  %v820_v61 = vadd.f32 %v819_v57, %v2098_v45 }
  0xef   : > { %v663_v62 = vpop.f32.mrf.mxu0  ;;  %v823_v63 = vpop.f32.mrf.mxu1  ;;  %v962_v2 = vmax.f32 %v658_v54, 0.0  ;;  %v1026_v3 = vmax.f32 %v818_v55, 0.0 }
  0xf0   : > { %1468 = vst [vmem:[%s2108_s5 + $0x20] sm:$0xff] %v1791_v58  ;;  %1500 = vst [vmem:[%s2108_s5 + $0x120] sm:$0xff] %v1823_v59  ;;  %v664_v0 = vadd.f32 %v663_v62, %v2096_v44  ;;  %v824_v1 = vadd.f32 %v823_v63, %v2096_v44  ;;  %v963_v4 = vmax.f32 %v660_v60, 0.0  ;;  %v1027_v5 = vmax.f32 %v820_v61, 0.0 }
  0xf1   : > { %v665_v6 = vpop.f32.mrf.mxu0  ;;  %v825_v7 = vpop.f32.mrf.mxu1 }
  0xf2   : > { %v666_v8 = vadd.f32 %v665_v6, %v2098_v45  ;;  %v826_v9 = vadd.f32 %v825_v7, %v2098_v45  ;;  %v1792_v10 = vpack.c.bf16 %v963_v4, %v962_v2  ;;  %v1824_v11 = vpack.c.bf16 %v1027_v5, %v1026_v3 }
  0xf3   : > { %v667_v12 = vpop.f32.mrf.mxu0  ;;  %v827_v13 = vpop.f32.mrf.mxu1  ;;  %v964_v14 = vmax.f32 %v664_v0, 0.0  ;;  %v1028_v15 = vmax.f32 %v824_v1, 0.0 }
  0xf4   : > { %v965_v16 = vmax.f32 %v666_v8, 0.0  ;;  %v1029_v17 = vmax.f32 %v826_v9, 0.0  ;;  %1469 = vst [vmem:[%s2108_s5 + $0x28] sm:$0xff] %v1792_v10  ;;  %1501 = vst [vmem:[%s2108_s5 + $0x128] sm:$0xff] %v1824_v11  ;;  %v668_v18 = vadd.f32 %v667_v12, %v2096_v44  ;;  %v828_v19 = vadd.f32 %v827_v13, %v2096_v44 }
  0xf5   : > { %v669_v20 = vpop.f32.mrf.mxu0  ;;  %v829_v21 = vpop.f32.mrf.mxu1 }
  0xf6   : > { %v1793_v22 = vpack.c.bf16 %v965_v16, %v964_v14  ;;  %v1825_v23 = vpack.c.bf16 %v1029_v17, %v1028_v15  ;;  %v670_v24 = vadd.f32 %v669_v20, %v2098_v45  ;;  %v830_v25 = vadd.f32 %v829_v21, %v2098_v45 }
  0xf7   : > { %v673_v26 = vpop.f32.mrf.mxu0  ;;  %v833_v27 = vpop.f32.mrf.mxu1  ;;  %v966_v30 = vmax.f32 %v668_v18, 0.0  ;;  %v1030_v31 = vmax.f32 %v828_v19, 0.0 }
  0xf8   : > { %1470 = vst [vmem:[%s2108_s5 + $0x30] sm:$0xff] %v1793_v22  ;;  %1502 = vst [vmem:[%s2108_s5 + $0x130] sm:$0xff] %v1825_v23  ;;  %v674_v28 = vadd.f32 %v673_v26, %v2096_v44  ;;  %v834_v29 = vadd.f32 %v833_v27, %v2096_v44  ;;  %v967_v32 = vmax.f32 %v670_v24, 0.0  ;;  %v1031_v33 = vmax.f32 %v830_v25, 0.0 }
  0xf9   : > { %v675_v34 = vpop.f32.mrf.mxu0  ;;  %v835_v35 = vpop.f32.mrf.mxu1 }
  0xfa   : > { %v676_v36 = vadd.f32 %v675_v34, %v2098_v45  ;;  %v836_v37 = vadd.f32 %v835_v35, %v2098_v45  ;;  %v1794_v38 = vpack.c.bf16 %v967_v32, %v966_v30  ;;  %v1826_v39 = vpack.c.bf16 %v1031_v33, %v1030_v31 }
  0xfb   : > { %v677_v40 = vpop.f32.mrf.mxu0  ;;  %v837_v41 = vpop.f32.mrf.mxu1  ;;  %v968_v42 = vmax.f32 %v674_v28, 0.0  ;;  %v1032_v43 = vmax.f32 %v834_v29, 0.0 }
  0xfc   : > { %v969_v46 = vmax.f32 %v676_v36, 0.0  ;;  %v1033_v47 = vmax.f32 %v836_v37, 0.0  ;;  %1471 = vst [vmem:[%s2108_s5 + $0x38] sm:$0xff] %v1794_v38  ;;  %1503 = vst [vmem:[%s2108_s5 + $0x138] sm:$0xff] %v1826_v39  ;;  %v678_v48 = vadd.f32 %v677_v40, %v2096_v44  ;;  %v838_v49 = vadd.f32 %v837_v41, %v2096_v44 }
  0xfd   : > { %v679_v50 = vpop.f32.mrf.mxu0  ;;  %v839_v51 = vpop.f32.mrf.mxu1 }
  0xfe   : > { %v1795_v52 = vpack.c.bf16 %v969_v46, %v968_v42  ;;  %v1827_v53 = vpack.c.bf16 %v1033_v47, %v1032_v43  ;;  %v680_v54 = vadd.f32 %v679_v50, %v2098_v45  ;;  %v840_v55 = vadd.f32 %v839_v51, %v2098_v45 }
  0xff   : > { %v683_v56 = vpop.f32.mrf.mxu0  ;;  %v843_v57 = vpop.f32.mrf.mxu1  ;;  %v970_v60 = vmax.f32 %v678_v48, 0.0  ;;  %v1034_v61 = vmax.f32 %v838_v49, 0.0 }
 0x100   : > { %1472 = vst [vmem:[%s2108_s5 + $0x40] sm:$0xff] %v1795_v52  ;;  %1504 = vst [vmem:[%s2108_s5 + $0x140] sm:$0xff] %v1827_v53  ;;  %v684_v58 = vadd.f32 %v683_v56, %v2096_v44  ;;  %v844_v59 = vadd.f32 %v843_v57, %v2096_v44  ;;  %v971_v62 = vmax.f32 %v680_v54, 0.0  ;;  %v1035_v63 = vmax.f32 %v840_v55, 0.0 }
 0x101   : > { %v685_v0 = vpop.f32.mrf.mxu0  ;;  %v845_v1 = vpop.f32.mrf.mxu1 }
 0x102   : > { %v686_v2 = vadd.f32 %v685_v0, %v2098_v45  ;;  %v846_v3 = vadd.f32 %v845_v1, %v2098_v45  ;;  %v1796_v4 = vpack.c.bf16 %v971_v62, %v970_v60  ;;  %v1828_v5 = vpack.c.bf16 %v1035_v63, %v1034_v61 }
 0x103   : > { %v687_v6 = vpop.f32.mrf.mxu0  ;;  %v847_v7 = vpop.f32.mrf.mxu1  ;;  %v972_v8 = vmax.f32 %v684_v58, 0.0  ;;  %v1036_v9 = vmax.f32 %v844_v59, 0.0 }
 0x104   : > { %v973_v10 = vmax.f32 %v686_v2, 0.0  ;;  %v1037_v11 = vmax.f32 %v846_v3, 0.0  ;;  %1473 = vst [vmem:[%s2108_s5 + $0x48] sm:$0xff] %v1796_v4  ;;  %1505 = vst [vmem:[%s2108_s5 + $0x148] sm:$0xff] %v1828_v5  ;;  %v688_v12 = vadd.f32 %v687_v6, %v2096_v44  ;;  %v848_v13 = vadd.f32 %v847_v7, %v2096_v44 }
 0x105   : > { %v689_v14 = vpop.f32.mrf.mxu0  ;;  %v849_v15 = vpop.f32.mrf.mxu1 }
 0x106   : > { %v1797_v16 = vpack.c.bf16 %v973_v10, %v972_v8  ;;  %v1829_v17 = vpack.c.bf16 %v1037_v11, %v1036_v9  ;;  %v690_v18 = vadd.f32 %v689_v14, %v2098_v45  ;;  %v850_v19 = vadd.f32 %v849_v15, %v2098_v45 }
 0x107   : > { %v693_v20 = vpop.f32.mrf.mxu0  ;;  %v853_v21 = vpop.f32.mrf.mxu1  ;;  %v974_v24 = vmax.f32 %v688_v12, 0.0  ;;  %v1038_v25 = vmax.f32 %v848_v13, 0.0 }
 0x108   : > { %1474 = vst [vmem:[%s2108_s5 + $0x50] sm:$0xff] %v1797_v16  ;;  %1506 = vst [vmem:[%s2108_s5 + $0x150] sm:$0xff] %v1829_v17  ;;  %v694_v22 = vadd.f32 %v693_v20, %v2096_v44  ;;  %v854_v23 = vadd.f32 %v853_v21, %v2096_v44  ;;  %v975_v26 = vmax.f32 %v690_v18, 0.0  ;;  %v1039_v27 = vmax.f32 %v850_v19, 0.0 }
 0x109   : > { %v695_v28 = vpop.f32.mrf.mxu0  ;;  %v855_v29 = vpop.f32.mrf.mxu1 }
 0x10a   : > { %v696_v30 = vadd.f32 %v695_v28, %v2098_v45  ;;  %v856_v31 = vadd.f32 %v855_v29, %v2098_v45  ;;  %v1798_v32 = vpack.c.bf16 %v975_v26, %v974_v24  ;;  %v1830_v33 = vpack.c.bf16 %v1039_v27, %v1038_v25 }
 0x10b   : > { %v697_v34 = vpop.f32.mrf.mxu0  ;;  %v857_v35 = vpop.f32.mrf.mxu1  ;;  %v976_v36 = vmax.f32 %v694_v22, 0.0  ;;  %v1040_v37 = vmax.f32 %v854_v23, 0.0 }
 0x10c   : > { %v977_v38 = vmax.f32 %v696_v30, 0.0  ;;  %v1041_v39 = vmax.f32 %v856_v31, 0.0  ;;  %1475 = vst [vmem:[%s2108_s5 + $0x58] sm:$0xff] %v1798_v32  ;;  %1507 = vst [vmem:[%s2108_s5 + $0x158] sm:$0xff] %v1830_v33  ;;  %v698_v40 = vadd.f32 %v697_v34, %v2096_v44  ;;  %v858_v41 = vadd.f32 %v857_v35, %v2096_v44 }
 0x10d   : > { %v699_v42 = vpop.f32.mrf.mxu0  ;;  %v859_v43 = vpop.f32.mrf.mxu1 }
 0x10e   : > { %v1799_v46 = vpack.c.bf16 %v977_v38, %v976_v36  ;;  %v1831_v47 = vpack.c.bf16 %v1041_v39, %v1040_v37  ;;  %v700_v48 = vadd.f32 %v699_v42, %v2098_v45  ;;  %v860_v49 = vadd.f32 %v859_v43, %v2098_v45 }
 0x10f   : > { %v703_v50 = vpop.f32.mrf.mxu0  ;;  %v863_v51 = vpop.f32.mrf.mxu1  ;;  %v978_v54 = vmax.f32 %v698_v40, 0.0  ;;  %v1042_v55 = vmax.f32 %v858_v41, 0.0 }
 0x110   : > { %1476 = vst [vmem:[%s2108_s5 + $0x60] sm:$0xff] %v1799_v46  ;;  %1508 = vst [vmem:[%s2108_s5 + $0x160] sm:$0xff] %v1831_v47  ;;  %v704_v52 = vadd.f32 %v703_v50, %v2096_v44  ;;  %v864_v53 = vadd.f32 %v863_v51, %v2096_v44  ;;  %v979_v56 = vmax.f32 %v700_v48, 0.0  ;;  %v1043_v57 = vmax.f32 %v860_v49, 0.0 }
 0x111   : > { %v705_v58 = vpop.f32.mrf.mxu0  ;;  %v865_v59 = vpop.f32.mrf.mxu1 }
 0x112   : > { %v706_v60 = vadd.f32 %v705_v58, %v2098_v45  ;;  %v866_v61 = vadd.f32 %v865_v59, %v2098_v45  ;;  %v1800_v62 = vpack.c.bf16 %v979_v56, %v978_v54  ;;  %v1832_v63 = vpack.c.bf16 %v1043_v57, %v1042_v55 }
 0x113   : > { %v707_v0 = vpop.f32.mrf.mxu0  ;;  %v867_v1 = vpop.f32.mrf.mxu1  ;;  %v980_v2 = vmax.f32 %v704_v52, 0.0  ;;  %v1044_v3 = vmax.f32 %v864_v53, 0.0 }
 0x114   : > { %v981_v4 = vmax.f32 %v706_v60, 0.0  ;;  %v1045_v5 = vmax.f32 %v866_v61, 0.0  ;;  %1477 = vst [vmem:[%s2108_s5 + $0x68] sm:$0xff] %v1800_v62  ;;  %1509 = vst [vmem:[%s2108_s5 + $0x168] sm:$0xff] %v1832_v63  ;;  %v708_v6 = vadd.f32 %v707_v0, %v2096_v44  ;;  %v868_v7 = vadd.f32 %v867_v1, %v2096_v44 }
 0x115   : > { %v709_v8 = vpop.f32.mrf.mxu0  ;;  %v869_v9 = vpop.f32.mrf.mxu1 }
 0x116   : > { %v1801_v10 = vpack.c.bf16 %v981_v4, %v980_v2  ;;  %v1833_v11 = vpack.c.bf16 %v1045_v5, %v1044_v3  ;;  %v710_v12 = vadd.f32 %v709_v8, %v2098_v45  ;;  %v870_v13 = vadd.f32 %v869_v9, %v2098_v45 }
 0x117   : > { %v713_v14 = vpop.f32.mrf.mxu0  ;;  %v873_v15 = vpop.f32.mrf.mxu1  ;;  %v982_v18 = vmax.f32 %v708_v6, 0.0  ;;  %v1046_v19 = vmax.f32 %v868_v7, 0.0 }
 0x118   : > { %1478 = vst [vmem:[%s2108_s5 + $0x70] sm:$0xff] %v1801_v10  ;;  %1510 = vst [vmem:[%s2108_s5 + $0x170] sm:$0xff] %v1833_v11  ;;  %v714_v16 = vadd.f32 %v713_v14, %v2096_v44  ;;  %v874_v17 = vadd.f32 %v873_v15, %v2096_v44  ;;  %v983_v20 = vmax.f32 %v710_v12, 0.0  ;;  %v1047_v21 = vmax.f32 %v870_v13, 0.0 }
 0x119   : > { %v715_v22 = vpop.f32.mrf.mxu0  ;;  %v875_v23 = vpop.f32.mrf.mxu1 }
 0x11a   : > { %v716_v24 = vadd.f32 %v715_v22, %v2098_v45  ;;  %v876_v25 = vadd.f32 %v875_v23, %v2098_v45  ;;  %v1802_v26 = vpack.c.bf16 %v983_v20, %v982_v18  ;;  %v1834_v27 = vpack.c.bf16 %v1047_v21, %v1046_v19 }
 0x11b   : > { %v717_v28 = vpop.f32.mrf.mxu0  ;;  %v877_v29 = vpop.f32.mrf.mxu1  ;;  %v984_v30 = vmax.f32 %v714_v16, 0.0  ;;  %v1048_v31 = vmax.f32 %v874_v17, 0.0 }
 0x11c   : > { %v985_v32 = vmax.f32 %v716_v24, 0.0  ;;  %v1049_v33 = vmax.f32 %v876_v25, 0.0  ;;  %1479 = vst [vmem:[%s2108_s5 + $0x78] sm:$0xff] %v1802_v26  ;;  %1511 = vst [vmem:[%s2108_s5 + $0x178] sm:$0xff] %v1834_v27  ;;  %v718_v34 = vadd.f32 %v717_v28, %v2096_v44  ;;  %v878_v35 = vadd.f32 %v877_v29, %v2096_v44 }
 0x11d   : > { %v719_v36 = vpop.f32.mrf.mxu0  ;;  %v879_v37 = vpop.f32.mrf.mxu1 }
 0x11e   : > { %v1803_v38 = vpack.c.bf16 %v985_v32, %v984_v30  ;;  %v1835_v39 = vpack.c.bf16 %v1049_v33, %v1048_v31  ;;  %v720_v40 = vadd.f32 %v719_v36, %v2098_v45  ;;  %v880_v41 = vadd.f32 %v879_v37, %v2098_v45 }
 0x11f   : > { %v723_v42 = vpop.f32.mrf.mxu0  ;;  %v883_v43 = vpop.f32.mrf.mxu1  ;;  %v986_v48 = vmax.f32 %v718_v34, 0.0  ;;  %v1050_v49 = vmax.f32 %v878_v35, 0.0 }
 0x120   : > { %1480 = vst [vmem:[%s2108_s5 + $0x80] sm:$0xff] %v1803_v38  ;;  %1512 = vst [vmem:[%s2108_s5 + $0x180] sm:$0xff] %v1835_v39  ;;  %v724_v46 = vadd.f32 %v723_v42, %v2096_v44  ;;  %v884_v47 = vadd.f32 %v883_v43, %v2096_v44  ;;  %v987_v50 = vmax.f32 %v720_v40, 0.0  ;;  %v1051_v51 = vmax.f32 %v880_v41, 0.0 }
 0x121   : > { %v725_v52 = vpop.f32.mrf.mxu0  ;;  %v885_v53 = vpop.f32.mrf.mxu1 }
 0x122   : > { %v726_v54 = vadd.f32 %v725_v52, %v2098_v45  ;;  %v886_v55 = vadd.f32 %v885_v53, %v2098_v45  ;;  %v1804_v56 = vpack.c.bf16 %v987_v50, %v986_v48  ;;  %v1836_v57 = vpack.c.bf16 %v1051_v51, %v1050_v49 }
 0x123   : > { %v727_v58 = vpop.f32.mrf.mxu0  ;;  %v887_v59 = vpop.f32.mrf.mxu1  ;;  %v988_v60 = vmax.f32 %v724_v46, 0.0  ;;  %v1052_v61 = vmax.f32 %v884_v47, 0.0 }
 0x124   : > { %v989_v62 = vmax.f32 %v726_v54, 0.0  ;;  %v1053_v63 = vmax.f32 %v886_v55, 0.0  ;;  %1481 = vst [vmem:[%s2108_s5 + $0x88] sm:$0xff] %v1804_v56  ;;  %1513 = vst [vmem:[%s2108_s5 + $0x188] sm:$0xff] %v1836_v57  ;;  %v728_v0 = vadd.f32 %v727_v58, %v2096_v44  ;;  %v888_v1 = vadd.f32 %v887_v59, %v2096_v44 }
 0x125   : > { %v729_v2 = vpop.f32.mrf.mxu0  ;;  %v889_v3 = vpop.f32.mrf.mxu1 }
 0x126   : > { %v1805_v4 = vpack.c.bf16 %v989_v62, %v988_v60  ;;  %v1837_v5 = vpack.c.bf16 %v1053_v63, %v1052_v61  ;;  %v730_v6 = vadd.f32 %v729_v2, %v2098_v45  ;;  %v890_v7 = vadd.f32 %v889_v3, %v2098_v45 }
 0x127   : > { %v733_v8 = vpop.f32.mrf.mxu0  ;;  %v893_v9 = vpop.f32.mrf.mxu1  ;;  %v990_v12 = vmax.f32 %v728_v0, 0.0  ;;  %v1054_v13 = vmax.f32 %v888_v1, 0.0 }
 0x128   : > { %1482 = vst [vmem:[%s2108_s5 + $0x90] sm:$0xff] %v1805_v4  ;;  %1514 = vst [vmem:[%s2108_s5 + $0x190] sm:$0xff] %v1837_v5  ;;  %v734_v10 = vadd.f32 %v733_v8, %v2096_v44  ;;  %v894_v11 = vadd.f32 %v893_v9, %v2096_v44  ;;  %v991_v14 = vmax.f32 %v730_v6, 0.0  ;;  %v1055_v15 = vmax.f32 %v890_v7, 0.0 }
 0x129   : > { %v735_v16 = vpop.f32.mrf.mxu0  ;;  %v895_v17 = vpop.f32.mrf.mxu1 }
 0x12a   : > { %v736_v18 = vadd.f32 %v735_v16, %v2098_v45  ;;  %v896_v19 = vadd.f32 %v895_v17, %v2098_v45  ;;  %v1806_v20 = vpack.c.bf16 %v991_v14, %v990_v12  ;;  %v1838_v21 = vpack.c.bf16 %v1055_v15, %v1054_v13 }
 0x12b   : > { %v737_v22 = vpop.f32.mrf.mxu0  ;;  %v897_v23 = vpop.f32.mrf.mxu1  ;;  %v992_v24 = vmax.f32 %v734_v10, 0.0  ;;  %v1056_v25 = vmax.f32 %v894_v11, 0.0 }
 0x12c   : > { %v993_v26 = vmax.f32 %v736_v18, 0.0  ;;  %v1057_v27 = vmax.f32 %v896_v19, 0.0  ;;  %1483 = vst [vmem:[%s2108_s5 + $0x98] sm:$0xff] %v1806_v20  ;;  %1515 = vst [vmem:[%s2108_s5 + $0x198] sm:$0xff] %v1838_v21  ;;  %v738_v28 = vadd.f32 %v737_v22, %v2096_v44  ;;  %v898_v29 = vadd.f32 %v897_v23, %v2096_v44 }
 0x12d   : > { %v739_v30 = vpop.f32.mrf.mxu0  ;;  %v899_v31 = vpop.f32.mrf.mxu1 }
 0x12e   : > { %v1807_v32 = vpack.c.bf16 %v993_v26, %v992_v24  ;;  %v1839_v33 = vpack.c.bf16 %v1057_v27, %v1056_v25  ;;  %v740_v34 = vadd.f32 %v739_v30, %v2098_v45  ;;  %v900_v35 = vadd.f32 %v899_v31, %v2098_v45 }
 0x12f   : > { %v743_v36 = vpop.f32.mrf.mxu0  ;;  %v903_v37 = vpop.f32.mrf.mxu1  ;;  %v994_v40 = vmax.f32 %v738_v28, 0.0  ;;  %v1058_v41 = vmax.f32 %v898_v29, 0.0 }
 0x130   : > { %1484 = vst [vmem:[%s2108_s5 + $0xa0] sm:$0xff] %v1807_v32  ;;  %1516 = vst [vmem:[%s2108_s5 + $0x1a0] sm:$0xff] %v1839_v33  ;;  %v744_v38 = vadd.f32 %v743_v36, %v2096_v44  ;;  %v904_v39 = vadd.f32 %v903_v37, %v2096_v44  ;;  %v995_v42 = vmax.f32 %v740_v34, 0.0  ;;  %v1059_v43 = vmax.f32 %v900_v35, 0.0 }
 0x131   : > { %v745_v46 = vpop.f32.mrf.mxu0  ;;  %v905_v47 = vpop.f32.mrf.mxu1 }
 0x132   : > { %v746_v48 = vadd.f32 %v745_v46, %v2098_v45  ;;  %v906_v49 = vadd.f32 %v905_v47, %v2098_v45  ;;  %v1808_v50 = vpack.c.bf16 %v995_v42, %v994_v40  ;;  %v1840_v51 = vpack.c.bf16 %v1059_v43, %v1058_v41 }
 0x133   : > { %v747_v52 = vpop.f32.mrf.mxu0  ;;  %v907_v53 = vpop.f32.mrf.mxu1  ;;  %v996_v54 = vmax.f32 %v744_v38, 0.0  ;;  %v1060_v55 = vmax.f32 %v904_v39, 0.0 }
 0x134   : > { %v997_v56 = vmax.f32 %v746_v48, 0.0  ;;  %v1061_v57 = vmax.f32 %v906_v49, 0.0  ;;  %1485 = vst [vmem:[%s2108_s5 + $0xa8] sm:$0xff] %v1808_v50  ;;  %1517 = vst [vmem:[%s2108_s5 + $0x1a8] sm:$0xff] %v1840_v51  ;;  %v748_v58 = vadd.f32 %v747_v52, %v2096_v44  ;;  %v908_v59 = vadd.f32 %v907_v53, %v2096_v44 }
 0x135   : > { %v749_v60 = vpop.f32.mrf.mxu0  ;;  %v909_v61 = vpop.f32.mrf.mxu1 }
 0x136   : > { %v1809_v62 = vpack.c.bf16 %v997_v56, %v996_v54  ;;  %v1841_v63 = vpack.c.bf16 %v1061_v57, %v1060_v55  ;;  %v750_v0 = vadd.f32 %v749_v60, %v2098_v45  ;;  %v910_v1 = vadd.f32 %v909_v61, %v2098_v45 }
 0x137   : > { %v753_v2 = vpop.f32.mrf.mxu0  ;;  %v913_v3 = vpop.f32.mrf.mxu1  ;;  %v998_v6 = vmax.f32 %v748_v58, 0.0  ;;  %v1062_v7 = vmax.f32 %v908_v59, 0.0 }
 0x138   : > { %1486 = vst [vmem:[%s2108_s5 + $0xb0] sm:$0xff] %v1809_v62  ;;  %1518 = vst [vmem:[%s2108_s5 + $0x1b0] sm:$0xff] %v1841_v63  ;;  %v754_v4 = vadd.f32 %v753_v2, %v2096_v44  ;;  %v914_v5 = vadd.f32 %v913_v3, %v2096_v44  ;;  %v999_v8 = vmax.f32 %v750_v0, 0.0  ;;  %v1063_v9 = vmax.f32 %v910_v1, 0.0 }
 0x139   : > { %v755_v10 = vpop.f32.mrf.mxu0  ;;  %v915_v11 = vpop.f32.mrf.mxu1 }
 0x13a   : > { %v756_v12 = vadd.f32 %v755_v10, %v2098_v45  ;;  %v916_v13 = vadd.f32 %v915_v11, %v2098_v45  ;;  %v1810_v14 = vpack.c.bf16 %v999_v8, %v998_v6  ;;  %v1842_v15 = vpack.c.bf16 %v1063_v9, %v1062_v7 }
 0x13b   : > { %v757_v16 = vpop.f32.mrf.mxu0  ;;  %v917_v17 = vpop.f32.mrf.mxu1  ;;  %v1000_v18 = vmax.f32 %v754_v4, 0.0  ;;  %v1064_v19 = vmax.f32 %v914_v5, 0.0 }
 0x13c   : > { %v1001_v20 = vmax.f32 %v756_v12, 0.0  ;;  %v1065_v21 = vmax.f32 %v916_v13, 0.0  ;;  %1487 = vst [vmem:[%s2108_s5 + $0xb8] sm:$0xff] %v1810_v14  ;;  %1519 = vst [vmem:[%s2108_s5 + $0x1b8] sm:$0xff] %v1842_v15  ;;  %v758_v22 = vadd.f32 %v757_v16, %v2096_v44  ;;  %v918_v23 = vadd.f32 %v917_v17, %v2096_v44 }
 0x13d   : > { %v759_v24 = vpop.f32.mrf.mxu0  ;;  %v919_v25 = vpop.f32.mrf.mxu1 }
 0x13e   : > { %v1811_v26 = vpack.c.bf16 %v1001_v20, %v1000_v18  ;;  %v1843_v27 = vpack.c.bf16 %v1065_v21, %v1064_v19  ;;  %v760_v28 = vadd.f32 %v759_v24, %v2098_v45  ;;  %v920_v29 = vadd.f32 %v919_v25, %v2098_v45 }
 0x13f   : > { %v763_v30 = vpop.f32.mrf.mxu0  ;;  %v923_v31 = vpop.f32.mrf.mxu1  ;;  %v1002_v34 = vmax.f32 %v758_v22, 0.0  ;;  %v1066_v35 = vmax.f32 %v918_v23, 0.0 }
 0x140   : > { %1488 = vst [vmem:[%s2108_s5 + $0xc0] sm:$0xff] %v1811_v26  ;;  %1520 = vst [vmem:[%s2108_s5 + $0x1c0] sm:$0xff] %v1843_v27  ;;  %v764_v32 = vadd.f32 %v763_v30, %v2096_v44  ;;  %v924_v33 = vadd.f32 %v923_v31, %v2096_v44  ;;  %v1003_v36 = vmax.f32 %v760_v28, 0.0  ;;  %v1067_v37 = vmax.f32 %v920_v29, 0.0 }
 0x141   : > { %v765_v38 = vpop.f32.mrf.mxu0  ;;  %v925_v39 = vpop.f32.mrf.mxu1 }
 0x142   : > { %v766_v40 = vadd.f32 %v765_v38, %v2098_v45  ;;  %v926_v41 = vadd.f32 %v925_v39, %v2098_v45  ;;  %v1812_v42 = vpack.c.bf16 %v1003_v36, %v1002_v34  ;;  %v1844_v43 = vpack.c.bf16 %v1067_v37, %v1066_v35 }
 0x143   : > { %v767_v46 = vpop.f32.mrf.mxu0  ;;  %v927_v47 = vpop.f32.mrf.mxu1  ;;  %v1004_v48 = vmax.f32 %v764_v32, 0.0  ;;  %v1068_v49 = vmax.f32 %v924_v33, 0.0 }
 0x144   : > { %v1005_v50 = vmax.f32 %v766_v40, 0.0  ;;  %v1069_v51 = vmax.f32 %v926_v41, 0.0  ;;  %1489 = vst [vmem:[%s2108_s5 + $0xc8] sm:$0xff] %v1812_v42  ;;  %1521 = vst [vmem:[%s2108_s5 + $0x1c8] sm:$0xff] %v1844_v43  ;;  %v768_v52 = vadd.f32 %v767_v46, %v2096_v44  ;;  %v928_v53 = vadd.f32 %v927_v47, %v2096_v44 }
 0x145   : > { %v769_v54 = vpop.f32.mrf.mxu0  ;;  %v929_v55 = vpop.f32.mrf.mxu1 }
 0x146   : > { %v1813_v56 = vpack.c.bf16 %v1005_v50, %v1004_v48  ;;  %v1845_v57 = vpack.c.bf16 %v1069_v51, %v1068_v49  ;;  %v770_v58 = vadd.f32 %v769_v54, %v2098_v45  ;;  %v930_v59 = vadd.f32 %v929_v55, %v2098_v45 }
 0x147   : > { %v773_v60 = vpop.f32.mrf.mxu0  ;;  %v933_v61 = vpop.f32.mrf.mxu1  ;;  %v1006_v0 = vmax.f32 %v768_v52, 0.0  ;;  %v1070_v1 = vmax.f32 %v928_v53, 0.0 }
 0x148   : > { %1490 = vst [vmem:[%s2108_s5 + $0xd0] sm:$0xff] %v1813_v56  ;;  %1522 = vst [vmem:[%s2108_s5 + $0x1d0] sm:$0xff] %v1845_v57  ;;  %v774_v62 = vadd.f32 %v773_v60, %v2096_v44  ;;  %v934_v63 = vadd.f32 %v933_v61, %v2096_v44  ;;  %v1007_v2 = vmax.f32 %v770_v58, 0.0  ;;  %v1071_v3 = vmax.f32 %v930_v59, 0.0 }
 0x149   : > { %v775_v4 = vpop.f32.mrf.mxu0  ;;  %v935_v5 = vpop.f32.mrf.mxu1 }
 0x14a   : > { %v776_v6 = vadd.f32 %v775_v4, %v2098_v45  ;;  %v936_v7 = vadd.f32 %v935_v5, %v2098_v45  ;;  %v1814_v8 = vpack.c.bf16 %v1007_v2, %v1006_v0  ;;  %v1846_v9 = vpack.c.bf16 %v1071_v3, %v1070_v1 }
 0x14b   : > { %v777_v10 = vpop.f32.mrf.mxu0  ;;  %v937_v11 = vpop.f32.mrf.mxu1  ;;  %v1008_v12 = vmax.f32 %v774_v62, 0.0  ;;  %v1072_v13 = vmax.f32 %v934_v63, 0.0 }
 0x14c   : > { %v1009_v14 = vmax.f32 %v776_v6, 0.0  ;;  %v1073_v15 = vmax.f32 %v936_v7, 0.0  ;;  %1491 = vst [vmem:[%s2108_s5 + $0xd8] sm:$0xff] %v1814_v8  ;;  %1523 = vst [vmem:[%s2108_s5 + $0x1d8] sm:$0xff] %v1846_v9  ;;  %v778_v16 = vadd.f32 %v777_v10, %v2096_v44  ;;  %v938_v17 = vadd.f32 %v937_v11, %v2096_v44 }
 0x14d   : > { %v779_v18 = vpop.f32.mrf.mxu0  ;;  %v939_v19 = vpop.f32.mrf.mxu1 }
 0x14e   : > { %v1815_v20 = vpack.c.bf16 %v1009_v14, %v1008_v12  ;;  %v1847_v21 = vpack.c.bf16 %v1073_v15, %v1072_v13  ;;  %v780_v22 = vadd.f32 %v779_v18, %v2098_v45  ;;  %v940_v23 = vadd.f32 %v939_v19, %v2098_v45 }
 0x14f   : > { %v783_v24 = vpop.f32.mrf.mxu0  ;;  %v943_v25 = vpop.f32.mrf.mxu1  ;;  %v1010_v28 = vmax.f32 %v778_v16, 0.0  ;;  %v1074_v29 = vmax.f32 %v938_v17, 0.0 }
 0x150   : > { %1492 = vst [vmem:[%s2108_s5 + $0xe0] sm:$0xff] %v1815_v20  ;;  %1524 = vst [vmem:[%s2108_s5 + $0x1e0] sm:$0xff] %v1847_v21  ;;  %v784_v26 = vadd.f32 %v783_v24, %v2096_v44  ;;  %v944_v27 = vadd.f32 %v943_v25, %v2096_v44  ;;  %v1011_v30 = vmax.f32 %v780_v22, 0.0  ;;  %v1075_v31 = vmax.f32 %v940_v23, 0.0 }
 0x151   : > { %v785_v32 = vpop.f32.mrf.mxu0  ;;  %v945_v33 = vpop.f32.mrf.mxu1 }
 0x152   : > { %v786_v34 = vadd.f32 %v785_v32, %v2098_v45  ;;  %v946_v35 = vadd.f32 %v945_v33, %v2098_v45  ;;  %v1816_v36 = vpack.c.bf16 %v1011_v30, %v1010_v28  ;;  %v1848_v37 = vpack.c.bf16 %v1075_v31, %v1074_v29 }
 0x153   : > { %v787_v38 = vpop.f32.mrf.mxu0  ;;  %v947_v39 = vpop.f32.mrf.mxu1  ;;  %v1012_v40 = vmax.f32 %v784_v26, 0.0  ;;  %v1076_v41 = vmax.f32 %v944_v27, 0.0 }
 0x154   : > { %v1013_v42 = vmax.f32 %v786_v34, 0.0  ;;  %v1077_v43 = vmax.f32 %v946_v35, 0.0  ;;  %1493 = vst [vmem:[%s2108_s5 + $0xe8] sm:$0xff] %v1816_v36  ;;  %1525 = vst [vmem:[%s2108_s5 + $0x1e8] sm:$0xff] %v1848_v37  ;;  %v788_v46 = vadd.f32 %v787_v38, %v2096_v44  ;;  %v948_v47 = vadd.f32 %v947_v39, %v2096_v44 }
 0x155   : > { %v789_v48 = vpop.f32.mrf.mxu0  ;;  %v949_v49 = vpop.f32.mrf.mxu1 }
 0x156   : > { %v1817_v50 = vpack.c.bf16 %v1013_v42, %v1012_v40  ;;  %v1849_v51 = vpack.c.bf16 %v1077_v43, %v1076_v41  ;;  %v790_v52 = vadd.f32 %v789_v48, %v2098_v45  ;;  %v950_v53 = vadd.f32 %v949_v49, %v2098_v45 }
 0x157   : > { %v1014_v54 = vmax.f32 %v788_v46, 0.0  ;;  %v1078_v55 = vmax.f32 %v948_v47, 0.0 }
 0x158   : > { %1494 = vst [vmem:[%s2108_s5 + $0xf0] sm:$0xff] %v1817_v50  ;;  %1526 = vst [vmem:[%s2108_s5 + $0x1f0] sm:$0xff] %v1849_v51  ;;  %v1015_v56 = vmax.f32 %v790_v52, 0.0  ;;  %v1079_v57 = vmax.f32 %v950_v53, 0.0 }
 0x15a   : > { %v1818_v58 = vpack.c.bf16 %v1015_v56, %v1014_v54  ;;  %v1850_v59 = vpack.c.bf16 %v1079_v57, %v1078_v55 }
 0x15c   : > { %1495 = vst [vmem:[%s2108_s5 + $0xf8] sm:$0xff] %v1818_v58  ;;  %1527 = vst [vmem:[%s2108_s5 + $0x1f8] sm:$0xff] %v1850_v59 }
 0x15d PF: > { %s13_s14 = sadd.s32 1, %s1939_s14   ;;  %s2311_s12 = smov %s1935_s13 }
 0x15e   : > { %p10_p5 = scmp.ge.s32.totalorder %s13_s14, 6   ;;  %s2312_s13 = smov %s2314_s15 }
 0x160   :  { %12 = sbr.rel (!%p10_p5) target bundleno = 2 (0x2), region = 68 }

</bundles_post_ra>
